<compile_context>
chip_gen: v5e
topology: v5e:2x2
jax: 0.10.0
libtpu: 0.0.40
codegen_flags: <defaults>
</compile_context>

<pallas_src>
import functools

import jax
import jax.numpy as jnp
from jax.experimental import pallas as pl
from jax.experimental.pallas import tpu as pltpu


def _rmsnorm_kernel(x_ref, g_ref, o_ref, *, eps, seg_dim, num_segments):
    """Normalize each length-`seg_dim` lane segment of every row independently.

    num_segments == 1 : plain (rows, D) layout.
    num_segments == k : lane-packed layout — each VMEM row holds k independent
                        logical rows of width seg_dim (k * seg_dim lanes, dense).
    """
    x = x_ref[...].astype(jnp.float32)       # (tile_rows, num_segments*seg_dim)
    g = g_ref[...].astype(jnp.float32)       # (1,        num_segments*seg_dim), gamma*sqrt(D)
    for j in range(num_segments):            # tiny static loop (k <= 16)
        sl = slice(j * seg_dim, (j + 1) * seg_dim)
        xs = x[:, sl]
        gs = g[:, sl]
        ss = jnp.sum(xs * xs, axis=-1, keepdims=True)      # (tile_rows, 1)
        # max(sqrt(ss), eps) == sqrt(max(ss, eps^2)); rsqrt runs on the EUP slot.
        inv = jax.lax.rsqrt(jnp.maximum(ss, eps * eps))
        o_ref[:, sl] = (xs * inv * gs).astype(o_ref.dtype)


def _tpu_vmem_budget():
    """Returns (vmem_ceiling_bytes, target_block_bytes) for this TPU generation."""
    try:
        cap = int(pltpu.get_tpu_info().vmem_capacity_bytes)
    except Exception:
        cap = 64 << 20                      # conservative: assume v7x-class 64 MiB
    ceiling = max(32 << 20, (cap * 3) // 4)  # leave Mosaic internal-scratch headroom
    target = (4 << 20) if cap <= (64 << 20) else (8 << 20)
    return ceiling, target


def _pick_tile_rows(rows, width, itemsize, target_bytes):
    """Largest sublane-aligned row tile near target_bytes, with >=2 grid steps."""
    sub = max(8, 32 // max(1, itemsize))     # sublane packing: 8 f32 / 16 bf16 / 32 i8
    if rows <= sub:
        return rows                          # single full-first-dim block (legal)
    t = target_bytes // max(1, width * itemsize)
    t = max(sub, (t // sub) * sub)
    t = min(t, (rows // sub) * sub)
    if rows >= 2 * sub:
        # Guarantee grid >= 2 so the "parallel" axis shards across both v7x TCs.
        t = min(t, max(sub, ((rows // 2) // sub) * sub))
    return int(t)


def _vmem_need(tile_rows, width, itemsize):
    blk = tile_rows * width * itemsize
    f32_blk = tile_rows * width * 4
    n_f32_tmp = 1 if itemsize == 4 else 2    # fused elementwise chain: ~1 live f32 copy
    return 2 * blk + 2 * blk + 2 * width * 4 + n_f32_tmp * f32_blk + (2 << 20)


def rmsnorm(x, gamma, *, tile_rows=None, eps=1e-12):
    """x: (..., D); gamma: (D,). Returns same shape/dtype as x.

    `tile_rows`, if given, is in units of (possibly lane-packed) rows.
    """
    orig_shape = x.shape
    D = orig_shape[-1]
    rows = 1
    for s in orig_shape[:-1]:
        rows *= int(s)

    # Lane-dense packing for narrow D: view (rows, D) as (rows//k, k*D) so the
    # block last dim is 128-lane dense (dense vst, dense (8,128) VMEM tiling).
    k = 1
    if D < 128 and 128 % D == 0:
        kk = 128 // D
        if kk > 1 and rows % kk == 0:
            k = kk
    width = k * D
    rows_p = rows // k

    x2d = x.reshape(rows_p, width)
    # Fold sqrt(D) into gamma once (O(D), not the "pre-scale big input" trap).
    g_row = gamma.astype(jnp.float32) * jnp.float32(float(D) ** 0.5)
    if k > 1:
        g_row = jnp.tile(g_row, (k,))        # one copy of gamma per packed segment
    g2d = g_row.reshape(1, width)

    itemsize = jnp.dtype(x.dtype).itemsize
    sub = max(8, 32 // max(1, itemsize))
    vmem_ceiling, target_bytes = _tpu_vmem_budget()

    if tile_rows is None:
        tile_rows = _pick_tile_rows(rows_p, width, itemsize, target_bytes)
        # Shrink (sublane-aligned) if the conservative estimate busts the ceiling.
        while _vmem_need(tile_rows, width, itemsize) > vmem_ceiling and tile_rows > sub:
            tile_rows = max(sub, ((tile_rows // 2) // sub) * sub)

    grid = (pl.cdiv(rows_p, tile_rows),)     # ragged last block masked by Pallas
    vmem_limit = int(min(max(_vmem_need(tile_rows, width, itemsize), 32 << 20),
                         vmem_ceiling))

    out = pl.pallas_call(
        functools.partial(_rmsnorm_kernel, eps=eps, seg_dim=D, num_segments=k),
        out_shape=jax.ShapeDtypeStruct((rows_p, width), x.dtype),
        grid_spec=pltpu.PrefetchScalarGridSpec(
            num_scalar_prefetch=0,
            grid=grid,
            in_specs=[
                pl.BlockSpec((tile_rows, width), lambda i: (i, 0)),
                pl.BlockSpec((1, width), lambda i: (0, 0)),   # gamma: same block every step
            ],
            out_specs=pl.BlockSpec((tile_rows, width), lambda i: (i, 0)),
        ),
        compiler_params=pltpu.CompilerParams(
            dimension_semantics=("parallel",),
            vmem_limit_bytes=vmem_limit,
        ),
    )(x2d, g2d)

    return out.reshape(orig_shape)


def rmsnorm_reference(x, gamma):
    """Pure-JAX reference matching torch F.normalize(x, dim=-1)*gamma*sqrt(D)."""
    D = x.shape[-1]
    xf = x.astype(jnp.float32)
    norm = jnp.sqrt(jnp.sum(xf * xf, axis=-1, keepdims=True))
    out = xf / jnp.maximum(norm, 1e-12) * gamma.astype(jnp.float32) * (float(D) ** 0.5)
    return out.astype(x.dtype)


if __name__ == "__main__":
    key = jax.random.PRNGKey(0)

    # Case 1: module-shaped input (batch=2, seq=8, hidden=32), f32.
    # D=32 < 128 -> lane-dense packing path (k=4), single dense block.
    B, S, D = 2, 8, 32
    x = jax.random.normal(key, (B, S, D), dtype=jnp.float32)
    gamma = jnp.ones((D,), dtype=jnp.float32)      # nn.Parameter(torch.ones(dim))
    out = jax.block_until_ready(rmsnorm(x, gamma))
    ref = rmsnorm_reference(x, gamma)
    assert out.shape == x.shape and out.dtype == x.dtype
    assert jnp.allclose(out, ref, atol=1e-5, rtol=1e-5), "f32 packed mismatch"

    # Case 2: ragged row count (15 rows, not divisible by k) -> unpacked
    # fallback; forced small tile so the masked last grid block is exercised.
    x2 = jax.random.normal(jax.random.fold_in(key, 1), (3, 5, D), dtype=jnp.float32)
    out2 = jax.block_until_ready(rmsnorm(x2, gamma, tile_rows=8))
    ref2 = rmsnorm_reference(x2, gamma)
    assert jnp.allclose(out2, ref2, atol=1e-5, rtol=1e-5), "ragged-rows mismatch"

    # Case 3: bf16 input, D=128 (already lane dense); auto tiling caps the
    # tile at rows//2 so the "parallel" grid has 2 steps (megacore split).
    D3 = 128
    x3 = jax.random.normal(jax.random.fold_in(key, 2), (4, 8, D3), dtype=jnp.bfloat16)
    g3 = jnp.ones((D3,), dtype=jnp.float32)
    out3 = jax.block_until_ready(rmsnorm(x3, g3))
    ref3 = rmsnorm_reference(x3, g3)
    assert out3.dtype == jnp.bfloat16
    assert jnp.allclose(out3.astype(jnp.float32), ref3.astype(jnp.float32),
                        atol=5e-2, rtol=5e-2), "bf16 mismatch vs reference"

    # Case 4: packed path with a multi-step grid (64 rows -> 16 packed rows,
    # auto tile capped to 8 so grid=(2,)).
    x4 = jax.random.normal(jax.random.fold_in(key, 3), (8, 8, D), dtype=jnp.float32)
    out4 = jax.block_until_ready(rmsnorm(x4, gamma))
    ref4 = rmsnorm_reference(x4, gamma)
    assert jnp.allclose(out4, ref4, atol=1e-5, rtol=1e-5), "packed multi-tile mismatch"

    print("KERNEL_OK")
</pallas_src>

<mosaic_0001>
module attributes {stable_mosaic.version = 11 : i64} {
  func.func @_rmsnorm_kernel(%arg0: i32, %arg1: memref<4x128xf32, #tpu.memory_space<vmem>>, %arg2: memref<1x128xf32, #tpu.memory_space<vmem>>, %arg3: memref<4x128xf32, #tpu.memory_space<vmem>>) attributes {dimension_semantics = [#tpu.dimension_semantics<parallel>], iteration_bounds = array<i64: 1>, scalar_prefetch = 0 : i64, scratch_operands = 0 : i64, tpu.core_type = #tpu.core_type<tc>, window_params = [{transform_indices = @transform_0, window_bounds = array<i64: 4, 128>}, {pipeline_mode = #tpu.pipeline_mode<synchronous>, transform_indices = @transform_1, window_bounds = array<i64: 1, 128>}, {transform_indices = @transform_2, window_bounds = array<i64: 4, 128>}]} {
    %c0 = arith.constant 0 : index
    %c0_0 = arith.constant 0 : index
    %0 = vector.load %arg1[%c0, %c0_0] : memref<4x128xf32, #tpu.memory_space<vmem>>, vector<4x128xf32>
    %c0_1 = arith.constant 0 : index
    %c0_2 = arith.constant 0 : index
    %1 = vector.load %arg2[%c0_1, %c0_2] : memref<1x128xf32, #tpu.memory_space<vmem>>, vector<1x128xf32>
    %2 = vector.extract_strided_slice %0 {offsets = [0, 0], sizes = [4, 32], strides = [1, 1]} : vector<4x128xf32> to vector<4x32xf32>
    %3 = vector.extract_strided_slice %1 {offsets = [0, 0], sizes = [1, 32], strides = [1, 1]} : vector<1x128xf32> to vector<1x32xf32>
    %4 = arith.mulf %2, %2 : vector<4x32xf32>
    %cst = arith.constant dense<0.000000e+00> : vector<4xf32>
    %5 = vector.multi_reduction <add>, %4, %cst [1] : vector<4x32xf32> to vector<4xf32>
    %6 = vector.shape_cast %5 : vector<4xf32> to vector<4x1xf32>
    %cst_3 = arith.constant 1.000000e-24 : f32
    %7 = vector.broadcast %cst_3 : f32 to vector<4x1xf32>
    %8 = arith.maximumf %6, %7 : vector<4x1xf32>
    %9 = math.rsqrt %8 : vector<4x1xf32>
    %10 = vector.broadcast %9 : vector<4x1xf32> to vector<4x32xf32>
    %11 = arith.mulf %2, %10 : vector<4x32xf32>
    %12 = vector.broadcast %3 : vector<1x32xf32> to vector<4x32xf32>
    %13 = arith.mulf %11, %12 : vector<4x32xf32>
    %c0_4 = arith.constant 0 : index
    %c0_5 = arith.constant 0 : index
    %14 = vector.load %arg3[%c0_4, %c0_5] : memref<4x128xf32, #tpu.memory_space<vmem>>, vector<4x32xf32>
    tpu.vector_store %arg3[%c0_4, %c0_5], %13 {strides = array<i32>} : memref<4x128xf32, #tpu.memory_space<vmem>>, vector<4x32xf32>,
    %15 = vector.extract_strided_slice %0 {offsets = [0, 32], sizes = [4, 32], strides = [1, 1]} : vector<4x128xf32> to vector<4x32xf32>
    %16 = vector.extract_strided_slice %1 {offsets = [0, 32], sizes = [1, 32], strides = [1, 1]} : vector<1x128xf32> to vector<1x32xf32>
    %17 = arith.mulf %15, %15 : vector<4x32xf32>
    %cst_6 = arith.constant dense<0.000000e+00> : vector<4xf32>
    %18 = vector.multi_reduction <add>, %17, %cst_6 [1] : vector<4x32xf32> to vector<4xf32>
    %19 = vector.shape_cast %18 : vector<4xf32> to vector<4x1xf32>
    %cst_7 = arith.constant 1.000000e-24 : f32
    %20 = vector.broadcast %cst_7 : f32 to vector<4x1xf32>
    %21 = arith.maximumf %19, %20 : vector<4x1xf32>
    %22 = math.rsqrt %21 : vector<4x1xf32>
    %23 = vector.broadcast %22 : vector<4x1xf32> to vector<4x32xf32>
    %24 = arith.mulf %15, %23 : vector<4x32xf32>
    %25 = vector.broadcast %16 : vector<1x32xf32> to vector<4x32xf32>
    %26 = arith.mulf %24, %25 : vector<4x32xf32>
    %c0_8 = arith.constant 0 : index
    %c32 = arith.constant 32 : index
    %27 = vector.load %arg3[%c0_8, %c32] : memref<4x128xf32, #tpu.memory_space<vmem>>, vector<4x32xf32>
    tpu.vector_store %arg3[%c0_8, %c32], %26 {strides = array<i32>} : memref<4x128xf32, #tpu.memory_space<vmem>>, vector<4x32xf32>,
    %28 = vector.extract_strided_slice %0 {offsets = [0, 64], sizes = [4, 32], strides = [1, 1]} : vector<4x128xf32> to vector<4x32xf32>
    %29 = vector.extract_strided_slice %1 {offsets = [0, 64], sizes = [1, 32], strides = [1, 1]} : vector<1x128xf32> to vector<1x32xf32>
    %30 = arith.mulf %28, %28 : vector<4x32xf32>
    %cst_9 = arith.constant dense<0.000000e+00> : vector<4xf32>
    %31 = vector.multi_reduction <add>, %30, %cst_9 [1] : vector<4x32xf32> to vector<4xf32>
    %32 = vector.shape_cast %31 : vector<4xf32> to vector<4x1xf32>
    %cst_10 = arith.constant 1.000000e-24 : f32
    %33 = vector.broadcast %cst_10 : f32 to vector<4x1xf32>
    %34 = arith.maximumf %32, %33 : vector<4x1xf32>
    %35 = math.rsqrt %34 : vector<4x1xf32>
    %36 = vector.broadcast %35 : vector<4x1xf32> to vector<4x32xf32>
    %37 = arith.mulf %28, %36 : vector<4x32xf32>
    %38 = vector.broadcast %29 : vector<1x32xf32> to vector<4x32xf32>
    %39 = arith.mulf %37, %38 : vector<4x32xf32>
    %c0_11 = arith.constant 0 : index
    %c64 = arith.constant 64 : index
    %40 = vector.load %arg3[%c0_11, %c64] : memref<4x128xf32, #tpu.memory_space<vmem>>, vector<4x32xf32>
    tpu.vector_store %arg3[%c0_11, %c64], %39 {strides = array<i32>} : memref<4x128xf32, #tpu.memory_space<vmem>>, vector<4x32xf32>,
    %41 = vector.extract_strided_slice %0 {offsets = [0, 96], sizes = [4, 32], strides = [1, 1]} : vector<4x128xf32> to vector<4x32xf32>
    %42 = vector.extract_strided_slice %1 {offsets = [0, 96], sizes = [1, 32], strides = [1, 1]} : vector<1x128xf32> to vector<1x32xf32>
    %43 = arith.mulf %41, %41 : vector<4x32xf32>
    %cst_12 = arith.constant dense<0.000000e+00> : vector<4xf32>
    %44 = vector.multi_reduction <add>, %43, %cst_12 [1] : vector<4x32xf32> to vector<4xf32>
    %45 = vector.shape_cast %44 : vector<4xf32> to vector<4x1xf32>
    %cst_13 = arith.constant 1.000000e-24 : f32
    %46 = vector.broadcast %cst_13 : f32 to vector<4x1xf32>
    %47 = arith.maximumf %45, %46 : vector<4x1xf32>
    %48 = math.rsqrt %47 : vector<4x1xf32>
    %49 = vector.broadcast %48 : vector<4x1xf32> to vector<4x32xf32>
    %50 = arith.mulf %41, %49 : vector<4x32xf32>
    %51 = vector.broadcast %42 : vector<1x32xf32> to vector<4x32xf32>
    %52 = arith.mulf %50, %51 : vector<4x32xf32>
    %c0_14 = arith.constant 0 : index
    %c96 = arith.constant 96 : index
    %53 = vector.load %arg3[%c0_14, %c96] : memref<4x128xf32, #tpu.memory_space<vmem>>, vector<4x32xf32>
    tpu.vector_store %arg3[%c0_14, %c96], %52 {strides = array<i32>} : memref<4x128xf32, #tpu.memory_space<vmem>>, vector<4x32xf32>,
    return
  }
  func.func @transform_0(%arg0: i32) -> (i32, i32) {
    %c0_i32 = arith.constant 0 : i32
    %c0_i32_0 = arith.constant 0 : i32
    return %arg0, %c0_i32 : i32, i32
  }
  func.func @transform_1(%arg0: i32) -> (i32, i32) {
    %c0_i32 = arith.constant 0 : i32
    %c0_i32_0 = arith.constant 0 : i32
    %c0_i32_1 = arith.constant 0 : i32
    return %c0_i32, %c0_i32_0 : i32, i32
  }
  func.func @transform_2(%arg0: i32) -> (i32, i32) {
    %c0_i32 = arith.constant 0 : i32
    %c0_i32_0 = arith.constant 0 : i32
    return %arg0, %c0_i32 : i32, i32
  }
}

</mosaic_0001>

<bundles_post_ra>
// kernel: tpu_custom_call.1
= control target key start
LH: loop header
LB: loop body
LE: loop exit
PB: predicated region body
PF: predicated region fallthrough
CT: control target
= control target key end

     0   :  { %7 = vsyncpa [#allocation3], 0  ;;  %s282_s0 = inlined_call_operand.hbm [shape: f32[4,128], index: 0, kind: input, shape index: {}]   ;;  %s283_s1 = inlined_call_operand.hbm [shape: f32[1,128], index: 1, kind: input, shape index: {}]   ;;  %s284_s2 = inlined_call_operand.hbm [shape: f32[4,128], index: 2, kind: output, shape index: {}]  }
   0x1   :  { %8 = vsyncpa [#allocation6], 0 }
   0x2   :  { %9 = vsyncpa [#allocation4], 0  ;;  %s15_s11 = sshll.u32 %s282_s0, 4  ;;  %s239_s12 = smov [#allocation2]   ;;  %s16_s11 = int_to_ptr.hbm [resolvable:$true] %s15_s11 }
   0x3   :  { %s17_s13 = sshll.u32 %s239_s12, 4  ;;  %s26_s16 = sshll.u32 %s283_s1, 4  ;;  %s18_s13 = int_to_ptr.vmem [resolvable:$true] %s17_s13  ;;  %s27_s16 = int_to_ptr.hbm [resolvable:$true] %s26_s16 }
   0x4   :  { %20 = dma.hbm_to_vmem [thread:$0]  %s16_s11, 64, %s18_s13, [#allocation3]  }
   0x5   :  { %s240_s17 = smov [#allocation5]  }
   0x6   :  { %s28_s18 = sshll.u32 %s240_s17, 4  ;;  %s29_s18 = int_to_ptr.vmem [resolvable:$true] %s28_s18 }
   0x7   :  { %31 = dma.hbm_to_vmem [thread:$0]  %s27_s16, 16, %s29_s18, [#allocation6]  }
   0x8   :  { %233 = dma.done.wait [#allocation3], 64  }
   0x9   :  { %234 = vsyncadd [#allocation3], 4294967232 }
   0xa   :  { %235 = dma.done.wait [#allocation6], 16  }
   0xb   :  { %236 = vsyncadd [#allocation6], 4294967280  ;;  %v266_v0 = vld [vmem:[#allocation2] sm:$0xf]  ;;  %s241_s0 = smov 32   ;;  %s242_s19 = smov 96  }
   0xc   :  { %v42_v1 = vmul.f32 %v266_v0, %v266_v0  ;;  %s243_s1 = smov 64   ;;  %vm43_vm0 = vcmask 257024   ;;  %v152_v17 = vld [vmem:[#allocation5] ss:$0 sm:$0xff]  ;;  %vm84_vm9 = vcmask 519424   ;;  %s244_s20 = smov [#allocation7]  }
   0xd   :  { %s133_s21 = sshll.u32 %s244_s20, 4  ;;  %s135_s24 = sshll.u32 %s284_s2, 4  ;;  %vm105_vm14 = vcmask 781824   ;;  %vm126_vm15 = vcmask 1044224   ;;  %s134_s21 = int_to_ptr.vmem [resolvable:$true] %s133_s21  ;;  %s136_s24 = int_to_ptr.hbm [resolvable:$true] %s135_s24 }
   0xe   :  { %107 = vrot.lane.b32.xlu1 %v42_v1, %s241_s0  ;;  %65 = vrot.lane.b32.xlu0 %v42_v1, %s242_s19  ;;  %v44_v2 = vsel %vm43_vm0, %v42_v1, 0.0 }
  0x16   :  { %86 = vrot.lane.b32.xlu0 %v42_v1, %s243_s1 }
  0x38   :  { %45 = vadd.xlane.f32.xlu1 %v44_v2 }
  0x80   :  { %v108_v3 = vpop.permute.xlu1 %107  ;;  %v66_v4 = vpop.permute.xlu0 %65 }
  0x81   :  { %v110_v5 = vsel %vm43_vm0, %v108_v3, 0.0  ;;  %v68_v6 = vsel %vm43_vm0, %v66_v4, 0.0 }
  0x82   :  { %111 = vadd.xlane.f32.xlu0 %v110_v5  ;;  %69 = vadd.xlane.f32.xlu2 %v68_v6 }
  0x88   :  { %v87_v7 = vpop.permute.xlu0 %86 }
  0x89   :  { %v89_v8 = vsel %vm43_vm0, %v87_v7, 0.0 }
  0x8a   :  { %90 = vadd.xlane.f32.xlu2 %v89_v8 }
  0xab   :  { %v46_v9 = vpop.xlane.xlu1 %45 }
  0xac   :  { %v47_v10 = vmax.f32 %v46_v9, 1e-24 }
  0xae   :  { %153 = vrsqrt.f32 %v47_v10  ;;  %vm54_vm1 = vweird.f32 %v47_v10 }
  0xb4   :  { %v154_v11 = vpop.eup %153 }
  0xb5   :  { %v49_v12 = vmul.f32 %v154_v11, %v47_v10  ;;  %vm55_vm2 = vweird.f32 %v154_v11 }
  0xb6   :  { %vm56_vm3 = vmor %vm54_vm1, %vm55_vm2 }
  0xb7   :  { %v50_v13 = vmul.f32 %v154_v11, %v49_v12 }
  0xb9   :  { %v51_v14 = vmul.f32 0.5, %v50_v13 }
  0xbb   :  { %v52_v15 = vsub.f32 1.5, %v51_v14 }
  0xbd   :  { %v53_v16 = vmul.f32 %v154_v11, %v52_v15 }
  0xbf   :  { %v57_v18 = vsel %vm56_vm3, %v154_v11, %v53_v16 }
  0xc0   :  { %v58_v19 = vmul.f32 %v57_v18, %v266_v0 }
  0xc2   :  { %v62_v20 = vmul.f32 %v152_v17, %v58_v19 }
  0xc4   :  { %63 = vst.msk [vmem:[#allocation7] sm:$0xf] %vm43_vm0, %v62_v20 }
  0xf5   :  { %v70_v21 = vpop.xlane.xlu2 %69  ;;  %v112_v22 = vpop.xlane.xlu0 %111 }
  0xf6   :  { %v71_v23 = vmax.f32 %v70_v21, 1e-24  ;;  %v113_v24 = vmax.f32 %v112_v22, 1e-24 }
  0xf8   :  { %155 = vrsqrt.f32 %v71_v23  ;;  %vm78_vm5 = vweird.f32 %v71_v23  ;;  %vm120_vm7 = vweird.f32 %v113_v24 }
  0xf9   :  { %157 = vrsqrt.f32 %v113_v24 }
  0xfd   :  { %v91_v25 = vpop.xlane.xlu2 %90 }
  0xfe   :  { %v156_v26 = vpop.eup %155  ;;  %v92_v27 = vmax.f32 %v91_v25, 1e-24 }
  0xff   :  { %v158_v28 = vpop.eup %157  ;;  %v73_v29 = vmul.f32 %v156_v26, %v71_v23  ;;  %vm79_vm4 = vweird.f32 %v156_v26 }
 0x100   :  { %v115_v30 = vmul.f32 %v158_v28, %v113_v24  ;;  %159 = vrsqrt.f32 %v92_v27  ;;  %vm80_vm6 = vmor %vm78_vm5, %vm79_vm4  ;;  %vm121_vm8 = vweird.f32 %v158_v28  ;;  %vm99_vm12 = vweird.f32 %v92_v27 }
 0x101   :  { %v74_v31 = vmul.f32 %v156_v26, %v73_v29  ;;  %vm122_vm10 = vmor %vm120_vm7, %vm121_vm8 }
 0x102   :  { %v116_v32 = vmul.f32 %v158_v28, %v115_v30 }
 0x103   :  { %v75_v33 = vmul.f32 0.5, %v74_v31 }
 0x104   :  { %v117_v34 = vmul.f32 0.5, %v116_v32 }
 0x105   :  { %v76_v35 = vsub.f32 1.5, %v75_v33 }
 0x106   :  { %v160_v36 = vpop.eup %159  ;;  %v118_v37 = vsub.f32 1.5, %v117_v34 }
 0x107   :  { %v77_v38 = vmul.f32 %v156_v26, %v76_v35  ;;  %v94_v39 = vmul.f32 %v160_v36, %v92_v27  ;;  %vm100_vm11 = vweird.f32 %v160_v36 }
 0x108   :  { %v119_v43 = vmul.f32 %v158_v28, %v118_v37  ;;  %vm101_vm13 = vmor %vm99_vm12, %vm100_vm11 }
 0x109   :  { %v81_v40 = vsel %vm80_vm6, %v156_v26, %v77_v38  ;;  %v95_v41 = vmul.f32 %v160_v36, %v94_v39 }
 0x10a   :  { %v82_v42 = vmul.f32 %v81_v40, %v266_v0  ;;  %v123_v47 = vsel %vm122_vm10, %v158_v28, %v119_v43 }
 0x10b   :  { %v96_v44 = vmul.f32 0.5, %v95_v41  ;;  %v124_v49 = vmul.f32 %v123_v47, %v266_v0 }
 0x10c   :  { %v83_v45 = vmul.f32 %v152_v17, %v82_v42 }
 0x10d   :  { %v97_v46 = vsub.f32 1.5, %v96_v44  ;;  %v125_v53 = vmul.f32 %v152_v17, %v124_v49 }
 0x10e   :  { %85 = vst.msk [vmem:[#allocation7] sm:$0xf] %vm84_vm9, %v83_v45 }
 0x10f   :  { %v98_v48 = vmul.f32 %v160_v36, %v97_v46 }
 0x111   :  { %v102_v50 = vsel %vm101_vm13, %v160_v36, %v98_v48 }
 0x112   :  { %v103_v51 = vmul.f32 %v102_v50, %v266_v0 }
 0x114   :  { %v104_v52 = vmul.f32 %v152_v17, %v103_v51 }
 0x116   :  { %106 = vst.msk [vmem:[#allocation7] sm:$0xf] %vm105_vm14, %v104_v52 }
 0x117   :  { %127 = vst.msk [vmem:[#allocation7] sm:$0xf] %vm126_vm15, %v125_v53 }
 0x118   :  { %138 = dma.vmem_to_hbm [thread:$0]  %s134_s21, 64, %s136_s24, [#allocation4]  }
 0x119   :  { %237 = dma.done.wait [#allocation4], 64  }
 0x11a   :  { %238 = vsyncadd [#allocation4], 4294967232 }
 0x11b   :  { %143 = vsyncpa [#allocation3], 1 }
 0x11c   :  { %144 = vsyncpa [#allocation6], 1 }
 0x11d   :  { %145 = vsyncpa [#allocation4], 1 }

</bundles_post_ra>
